<compile_context>
chip_gen: v6e
topology: v6e:2x2x1
jax: 0.10.0
libtpu: 0.0.40
codegen_flags: <defaults>
</compile_context>

<pallas_src>
import math
import functools

import jax
import jax.numpy as jnp
from jax.experimental import pallas as pl
from jax.experimental.pallas import tpu as pltpu


def _round_up(x, m):
    return ((x + m - 1) // m) * m


def _padded_tile_bytes(rows, cols, itemsize):
    """Bytes a (rows, cols) tile actually occupies in VMEM ((sublane,128) padding)."""
    sublane = 8 * max(1, 4 // itemsize)          # 8 (f32) / 16 (bf16) / 32 (i8)
    return _round_up(max(rows, 1), sublane) * _round_up(max(cols, 1), 128) * itemsize


def _vmem_capacity_bytes():
    """Generation-aware VMEM capacity; conservative fallback when unavailable."""
    try:
        info = pltpu.get_tpu_info()
        cap = int(getattr(info, "vmem_capacity_bytes", 0) or 0)
        if cap > 0:
            return cap
    except Exception:
        pass
    return 64 << 20      # v7x per-TensorCore capacity: safe lower bound everywhere


def _pick_block_b(B, L, D, itemsize, fold_lanes, vmem_cap):
    """How many batch elements to fuse per grid step (padded-size aware)."""
    budget = max(8 << 20, min(vmem_cap // 2, vmem_cap - (16 << 20)))
    # Loop-invariant weights / biases (charged as double-buffered by default).
    fixed = 2 * (2 * _padded_tile_bytes(D, D, itemsize)
                 + 2 * _padded_tile_bytes(1, D, itemsize))
    if fold_lanes:
        io_per_b = _round_up(L * D, 128) * itemsize        # lane-dense row
    else:
        io_per_b = _padded_tile_bytes(L, D, itemsize)      # D padded to 128 lanes
    per_b = 2 * 4 * io_per_b                               # double-buffered q/k/v/out
    per_b += 2 * _padded_tile_bytes(L, L, 4)               # score + exp (f32)
    per_b += 5 * _padded_tile_bytes(L, D, 4)               # x / v_att / h / y temps (f32)
    bt = max(1, (budget - fixed) // max(1, per_b))
    bt = min(bt, B)
    bt = min(bt, max(1, 2048 // max(1, L)))                # ~2k fused FFN rows is plenty
    return max(1, int(bt))


def _attentive_kernel(q_ref, k_ref, v_ref, w1t_ref, b1_ref, w2t_ref, b2_ref,
                      o_ref, *, scale, block_b, seq_len, feat, fold_lanes,
                      matmul_dtype):
    if fold_lanes:
        # Lane-dense blocks (1, Bt, L*D) -> unfold to (Bt, L, D) in-kernel.
        q = q_ref[0].reshape(block_b, seq_len, feat)
        k = k_ref[0].reshape(block_b, seq_len, feat)
        v = v_ref[0].reshape(block_b, seq_len, feat)
    else:
        q = q_ref[...]
        k = k_ref[...]
        v = v_ref[...]

    mm_dtype = q.dtype if matmul_dtype is None else matmul_dtype

    # Apply the 1/(sqrt(d)+eps) scale in-kernel to the smaller tensor:
    # q (Bt*L*D elements) when L >= D, otherwise the (Bt, L, L) score.
    if seq_len >= feat:
        q_mm = (q.astype(jnp.float32) * scale).astype(mm_dtype)
        s = jnp.einsum("bld,bmd->blm", q_mm, k.astype(mm_dtype),
                       preferred_element_type=jnp.float32)
    else:
        s = jnp.einsum("bld,bmd->blm", q.astype(mm_dtype), k.astype(mm_dtype),
                       preferred_element_type=jnp.float32) * scale

    # Exact softmax; normalization deferred until after the PV matmul so the
    # divide touches Bt*L*D elements instead of Bt*L*L.
    s = s - jnp.max(s, axis=-1, keepdims=True)
    e = jnp.exp(s)
    denom = jnp.sum(e, axis=-1, keepdims=True)                       # (Bt, L, 1)
    v_att = jnp.einsum("blm,bmd->bld", e.astype(mm_dtype), v.astype(mm_dtype),
                       preferred_element_type=jnp.float32)
    v_att = v_att / denom                                            # exact softmax

    # Residual (f32), then FFN on the flattened (Bt*L, D) slab (L being a
    # multiple of the sublane count keeps this reshape free).
    x = q.astype(jnp.float32) + v_att
    x2 = x.reshape(block_b * seq_len, feat)

    w_dtype = w1t_ref.dtype if matmul_dtype is None else matmul_dtype
    w1t = w1t_ref[...].astype(w_dtype)          # (D, D) = W1^T, resident
    w2t = w2t_ref[...].astype(w_dtype)          # (D, D) = W2^T, resident
    b1 = b1_ref[...].astype(jnp.float32)        # (1, D)
    b2 = b2_ref[...].astype(jnp.float32)

    h = jnp.maximum(
        jnp.dot(x2.astype(w_dtype), w1t, preferred_element_type=jnp.float32) + b1,
        0.0)
    y = jnp.dot(h.astype(w_dtype), w2t, preferred_element_type=jnp.float32) + b2 + x2

    if fold_lanes:
        # (Bt*L, D) -> (Bt, L*D): lane-dense unmasked stores.
        o_ref[0] = y.reshape(block_b, seq_len * feat).astype(o_ref.dtype)
    else:
        o_ref[...] = y.reshape(block_b, seq_len, feat).astype(o_ref.dtype)


def attentive_module2(Q, K, V, w1, b1, w2, b2, *, epsilon=1e-8, block_b=None,
                      matmul_dtype=None, fold_lanes=False):
    """Pallas implementation of AttentiveModule2.forward (is_layer_norm=False).

    matmul_dtype : optionally jnp.bfloat16 for native-rate MXU matmuls
        (v5e/v6e/v7x); default None keeps operand dtype (exact vs reference).
    fold_lanes   : lane-dense (B, L*D) I/O when D < 128 and L*D % 128 == 0.
        Off by default until the in-kernel relayout is verified (bundle dump)
        to beat the masked vld/vst it replaces.
    """
    B, L, D = Q.shape
    dk = max(1.0, float(D))
    scale = 1.0 / (math.sqrt(dk) + epsilon)
    itemsize = jnp.dtype(Q.dtype).itemsize

    fold_lanes = bool(fold_lanes) and (D % 128 != 0) and ((L * D) % 128 == 0)
    # TODO(synk): enable fold_lanes by default once verified cheaper on-target.

    vmem_cap = _vmem_capacity_bytes()
    if block_b is None:
        block_b = _pick_block_b(B, L, D, itemsize, fold_lanes, vmem_cap)
    block_b = max(1, min(int(block_b), B))

    grid_b = pl.cdiv(B, block_b)
    B_pad = grid_b * block_b
    if B_pad != B:
        pad = ((0, B_pad - B), (0, 0), (0, 0))
        Qp, Kp, Vp = (jnp.pad(a, pad) for a in (Q, K, V))
    else:
        Qp, Kp, Vp = Q, K, V

    # Pre-transpose FFN weights once so the kernel never transposes
    # loop-invariant data.
    w1t, w2t = w1.T, w2.T
    b1_2d, b2_2d = b1.reshape(1, D), b2.reshape(1, D)

    if fold_lanes:
        Qin = Qp.reshape(grid_b, block_b, L * D)
        Kin = Kp.reshape(grid_b, block_b, L * D)
        Vin = Vp.reshape(grid_b, block_b, L * D)
        io_spec = pl.BlockSpec((1, block_b, L * D), lambda b: (b, 0, 0))
        out_shape = jax.ShapeDtypeStruct((grid_b, block_b, L * D), Q.dtype)
    else:
        Qin, Kin, Vin = Qp, Kp, Vp
        io_spec = pl.BlockSpec((block_b, L, D), lambda b: (b, 0, 0))
        out_shape = jax.ShapeDtypeStruct((B_pad, L, D), Q.dtype)
    out_spec = io_spec

    # Padded-size VMEM estimate -> explicit limit, capped below the physical
    # per-core capacity minus headroom (so we never ask for ~100 MiB on v7x).
    fixed = 2 * (2 * _padded_tile_bytes(D, D, itemsize)
                 + 2 * _padded_tile_bytes(1, D, itemsize))
    if fold_lanes:
        io_blk = _round_up(block_b, 8) * _round_up(L * D, 128) * itemsize
    else:
        io_blk = block_b * _padded_tile_bytes(L, D, itemsize)
    est_vmem = (fixed + 2 * 4 * io_blk
                + block_b * (2 * _padded_tile_bytes(L, L, 4)
                             + 5 * _padded_tile_bytes(L, D, 4)))
    vmem_limit = int(min(max(est_vmem * 3 // 2, 32 << 20),
                         max(vmem_cap - (12 << 20), 24 << 20)))

    cost = pl.CostEstimate(
        flops=int(B * (4 * L * L * D + 4 * L * D * D)),
        transcendentals=int(B * L * L),
        bytes_accessed=int(4 * B * L * D * itemsize
                           + 2 * D * D * itemsize + 2 * D * itemsize),
    )

    kernel = functools.partial(
        _attentive_kernel, scale=scale, block_b=block_b, seq_len=L, feat=D,
        fold_lanes=fold_lanes, matmul_dtype=matmul_dtype)

    # TODO(synk): on v7x use dimension_semantics=(pltpu.CORE_PARALLEL,) to split
    # the batch axis across both TensorCores; kept "parallel" so the same build
    # runs on single-core v5e/v6e and under the interpreter.
    # TODO(synk): single-buffer (pipeline_mode=pl.Buffered(1)) the loop-invariant
    # weight specs once verified on the target Mosaic; est_vmem already charges
    # them as double-buffered so the sizing stays safe either way.
    out = pl.pallas_call(
        kernel,
        out_shape=out_shape,
        grid_spec=pltpu.PrefetchScalarGridSpec(
            num_scalar_prefetch=0,
            grid=(grid_b,),
            in_specs=[
                io_spec,                                  # Q
                io_spec,                                  # K
                io_spec,                                  # V
                pl.BlockSpec((D, D), lambda b: (0, 0)),   # W1^T (resident)
                pl.BlockSpec((1, D), lambda b: (0, 0)),   # b1
                pl.BlockSpec((D, D), lambda b: (0, 0)),   # W2^T (resident)
                pl.BlockSpec((1, D), lambda b: (0, 0)),   # b2
            ],
            out_specs=out_spec,
        ),
        compiler_params=pltpu.CompilerParams(
            dimension_semantics=("parallel",),
            vmem_limit_bytes=vmem_limit),
        cost_estimate=cost,
    )(Qin, Kin, Vin, w1t, b1_2d, w2t, b2_2d)

    out = out.reshape(B_pad, L, D)
    if B_pad != B:
        out = out[:B]
    return out


def attentive_module2_ref(Q, K, V, w1, b1, w2, b2, epsilon=1e-8):
    """Pure-JAX reference mirroring the PyTorch forward exactly."""
    D = Q.shape[-1]
    dk = max(1.0, float(D))
    qk = jnp.einsum("bld,bmd->blm", Q, K) / (math.sqrt(dk) + epsilon)
    score = jax.nn.softmax(qk, axis=-1)
    v_att = jnp.einsum("blm,bmd->bld", score, V)
    x = Q + v_att
    h = jax.nn.relu(jnp.einsum("bld,ed->ble", x, w1) + b1)
    ffn = jnp.einsum("bld,ed->ble", h, w2) + b2
    return ffn + x


if __name__ == "__main__":
    B, L, D = 2, 8, 32  # batch, seq, input_size

    key = jax.random.PRNGKey(0)
    kq, kk, kv, kw1, kb1, kw2, kb2 = jax.random.split(key, 7)

    Q = jax.random.normal(kq, (B, L, D), dtype=jnp.float32)
    K = jax.random.normal(kk, (B, L, D), dtype=jnp.float32)
    V = jax.random.normal(kv, (B, L, D), dtype=jnp.float32)

    # linear1 / linear2: xavier_normal weights, PyTorch-default uniform biases.
    xav_std = math.sqrt(2.0 / (D + D))
    bias_bound = 1.0 / math.sqrt(D)
    w1 = xav_std * jax.random.normal(kw1, (D, D), dtype=jnp.float32)
    w2 = xav_std * jax.random.normal(kw2, (D, D), dtype=jnp.float32)
    b1 = jax.random.uniform(kb1, (D,), dtype=jnp.float32,
                            minval=-bias_bound, maxval=bias_bound)
    b2 = jax.random.uniform(kb2, (D,), dtype=jnp.float32,
                            minval=-bias_bound, maxval=bias_bound)

    out = attentive_module2(Q, K, V, w1, b1, w2, b2)
    out = jax.block_until_ready(out)

    ref = attentive_module2_ref(Q, K, V, w1, b1, w2, b2)
    assert out.shape == (B, L, D)
    assert jnp.allclose(out, ref, atol=1e-4, rtol=1e-4), "mismatch vs reference"

    print("KERNEL_OK")
</pallas_src>

<mosaic_0001>
module attributes {stable_mosaic.version = 11 : i64} {
  func.func @_attentive_kernel(%arg0: i32, %arg1: memref<2x8x32xf32, #tpu.memory_space<vmem>>, %arg2: memref<2x8x32xf32, #tpu.memory_space<vmem>>, %arg3: memref<2x8x32xf32, #tpu.memory_space<vmem>>, %arg4: memref<32x32xf32, #tpu.memory_space<vmem>>, %arg5: memref<1x32xf32, #tpu.memory_space<vmem>>, %arg6: memref<32x32xf32, #tpu.memory_space<vmem>>, %arg7: memref<1x32xf32, #tpu.memory_space<vmem>>, %arg8: memref<2x8x32xf32, #tpu.memory_space<vmem>>) attributes {dimension_semantics = [#tpu.dimension_semantics<parallel>], iteration_bounds = array<i64: 1>, scalar_prefetch = 0 : i64, scratch_operands = 0 : i64, tpu.core_type = #tpu.core_type<tc>, window_params = [{transform_indices = @transform_0, window_bounds = array<i64: 2, 8, 32>}, {transform_indices = @transform_1, window_bounds = array<i64: 2, 8, 32>}, {transform_indices = @transform_2, window_bounds = array<i64: 2, 8, 32>}, {pipeline_mode = #tpu.pipeline_mode<synchronous>, transform_indices = @transform_3, window_bounds = array<i64: 32, 32>}, {pipeline_mode = #tpu.pipeline_mode<synchronous>, transform_indices = @transform_4, window_bounds = array<i64: 1, 32>}, {pipeline_mode = #tpu.pipeline_mode<synchronous>, transform_indices = @transform_5, window_bounds = array<i64: 32, 32>}, {pipeline_mode = #tpu.pipeline_mode<synchronous>, transform_indices = @transform_6, window_bounds = array<i64: 1, 32>}, {transform_indices = @transform_7, window_bounds = array<i64: 2, 8, 32>}]} {
    %c0 = arith.constant 0 : index
    %c0_0 = arith.constant 0 : index
    %c0_1 = arith.constant 0 : index
    %0 = vector.load %arg1[%c0, %c0_0, %c0_1] : memref<2x8x32xf32, #tpu.memory_space<vmem>>, vector<2x8x32xf32>
    %c0_2 = arith.constant 0 : index
    %c0_3 = arith.constant 0 : index
    %c0_4 = arith.constant 0 : index
    %1 = vector.load %arg2[%c0_2, %c0_3, %c0_4] : memref<2x8x32xf32, #tpu.memory_space<vmem>>, vector<2x8x32xf32>
    %c0_5 = arith.constant 0 : index
    %c0_6 = arith.constant 0 : index
    %c0_7 = arith.constant 0 : index
    %2 = vector.load %arg3[%c0_5, %c0_6, %c0_7] : memref<2x8x32xf32, #tpu.memory_space<vmem>>, vector<2x8x32xf32>
    "tpu.trace_start"() <{level = 10 : i32, message = "bld,bmd->blm"}> : () -> ()
    %cst = arith.constant dense<0.000000e+00> : vector<2x8x8xf32>
    %3 = tpu.matmul %0, %1, %cst {dimension_numbers = #tpu.dot_dimension_numbers<[2], [2], [1], [1], [0, 0, 0, 1, 1, 1], [0], [0]>} : vector<2x8x32xf32>, vector<2x8x32xf32>, vector<2x8x8xf32> -> vector<2x8x8xf32>
    "tpu.trace_stop"() : () -> ()
    %cst_8 = arith.constant 0.176776692 : f32
    %4 = vector.broadcast %cst_8 : f32 to vector<2x8x8xf32>
    %5 = arith.mulf %3, %4 : vector<2x8x8xf32>
    %cst_9 = arith.constant dense<0xFF800000> : vector<2x8xf32>
    %6 = vector.multi_reduction <maximumf>, %5, %cst_9 [2] : vector<2x8x8xf32> to vector<2x8xf32>
    %7 = vector.shape_cast %6 : vector<2x8xf32> to vector<2x8x1xf32>
    %8 = vector.broadcast %7 : vector<2x8x1xf32> to vector<2x8x8xf32>
    %9 = arith.subf %5, %8 : vector<2x8x8xf32>
    %10 = math.exp %9 : vector<2x8x8xf32>
    %cst_10 = arith.constant dense<0.000000e+00> : vector<2x8xf32>
    %11 = vector.multi_reduction <add>, %10, %cst_10 [2] : vector<2x8x8xf32> to vector<2x8xf32>
    %12 = vector.shape_cast %11 : vector<2x8xf32> to vector<2x8x1xf32>
    "tpu.trace_start"() <{level = 10 : i32, message = "blm,bmd->bld"}> : () -> ()
    %cst_11 = arith.constant dense<0.000000e+00> : vector<2x8x32xf32>
    %13 = tpu.matmul %10, %2, %cst_11 {dimension_numbers = #tpu.dot_dimension_numbers<[2], [1], [1], [2], [0, 0, 0, 1, 1, 2], [0], [0]>} : vector<2x8x8xf32>, vector<2x8x32xf32>, vector<2x8x32xf32> -> vector<2x8x32xf32>
    "tpu.trace_stop"() : () -> ()
    %14 = vector.broadcast %12 : vector<2x8x1xf32> to vector<2x8x32xf32>
    %15 = arith.divf %13, %14 : vector<2x8x32xf32>
    %16 = arith.addf %0, %15 : vector<2x8x32xf32>
    %17 = vector.shape_cast %16 : vector<2x8x32xf32> to vector<16x32xf32>
    %c0_12 = arith.constant 0 : index
    %c0_13 = arith.constant 0 : index
    %18 = vector.load %arg4[%c0_12, %c0_13] : memref<32x32xf32, #tpu.memory_space<vmem>>, vector<32x32xf32>
    %c0_14 = arith.constant 0 : index
    %c0_15 = arith.constant 0 : index
    %19 = vector.load %arg6[%c0_14, %c0_15] : memref<32x32xf32, #tpu.memory_space<vmem>>, vector<32x32xf32>
    %c0_16 = arith.constant 0 : index
    %c0_17 = arith.constant 0 : index
    %20 = vector.load %arg5[%c0_16, %c0_17] : memref<1x32xf32, #tpu.memory_space<vmem>>, vector<1x32xf32>
    %c0_18 = arith.constant 0 : index
    %c0_19 = arith.constant 0 : index
    %21 = vector.load %arg7[%c0_18, %c0_19] : memref<1x32xf32, #tpu.memory_space<vmem>>, vector<1x32xf32>
    %cst_20 = arith.constant dense<0.000000e+00> : vector<16x32xf32>
    %22 = tpu.matmul %17, %18, %cst_20 {dimension_numbers = #tpu.dot_dimension_numbers<[1], [0], [0], [1], [0, 0, 1, 1], [], []>} : vector<16x32xf32>, vector<32x32xf32>, vector<16x32xf32> -> vector<16x32xf32>
    %23 = vector.broadcast %20 : vector<1x32xf32> to vector<16x32xf32>
    %24 = arith.addf %22, %23 : vector<16x32xf32>
    %cst_21 = arith.constant 0.000000e+00 : f32
    %25 = vector.broadcast %cst_21 : f32 to vector<16x32xf32>
    %26 = arith.maximumf %24, %25 : vector<16x32xf32>
    %cst_22 = arith.constant dense<0.000000e+00> : vector<16x32xf32>
    %27 = tpu.matmul %26, %19, %cst_22 {dimension_numbers = #tpu.dot_dimension_numbers<[1], [0], [0], [1], [0, 0, 1, 1], [], []>} : vector<16x32xf32>, vector<32x32xf32>, vector<16x32xf32> -> vector<16x32xf32>
    %28 = vector.broadcast %21 : vector<1x32xf32> to vector<16x32xf32>
    %29 = arith.addf %27, %28 : vector<16x32xf32>
    %30 = arith.addf %29, %17 : vector<16x32xf32>
    %31 = vector.shape_cast %30 : vector<16x32xf32> to vector<2x8x32xf32>
    %c0_23 = arith.constant 0 : index
    %c0_24 = arith.constant 0 : index
    %c0_25 = arith.constant 0 : index
    %32 = vector.load %arg8[%c0_23, %c0_24, %c0_25] : memref<2x8x32xf32, #tpu.memory_space<vmem>>, vector<2x8x32xf32>
    tpu.vector_store %arg8[%c0_23, %c0_24, %c0_25], %31 {strides = array<i32>} : memref<2x8x32xf32, #tpu.memory_space<vmem>>, vector<2x8x32xf32>,
    return
  }
  func.func @transform_0(%arg0: i32) -> (i32, i32, i32) {
    %c0_i32 = arith.constant 0 : i32
    %c0_i32_0 = arith.constant 0 : i32
    %c0_i32_1 = arith.constant 0 : i32
    return %arg0, %c0_i32, %c0_i32_0 : i32, i32, i32
  }
  func.func @transform_1(%arg0: i32) -> (i32, i32, i32) {
    %c0_i32 = arith.constant 0 : i32
    %c0_i32_0 = arith.constant 0 : i32
    %c0_i32_1 = arith.constant 0 : i32
    return %arg0, %c0_i32, %c0_i32_0 : i32, i32, i32
  }
  func.func @transform_2(%arg0: i32) -> (i32, i32, i32) {
    %c0_i32 = arith.constant 0 : i32
    %c0_i32_0 = arith.constant 0 : i32
    %c0_i32_1 = arith.constant 0 : i32
    return %arg0, %c0_i32, %c0_i32_0 : i32, i32, i32
  }
  func.func @transform_3(%arg0: i32) -> (i32, i32) {
    %c0_i32 = arith.constant 0 : i32
    %c0_i32_0 = arith.constant 0 : i32
    %c0_i32_1 = arith.constant 0 : i32
    return %c0_i32, %c0_i32_0 : i32, i32
  }
  func.func @transform_4(%arg0: i32) -> (i32, i32) {
    %c0_i32 = arith.constant 0 : i32
    %c0_i32_0 = arith.constant 0 : i32
    %c0_i32_1 = arith.constant 0 : i32
    return %c0_i32, %c0_i32_0 : i32, i32
  }
  func.func @transform_5(%arg0: i32) -> (i32, i32) {
    %c0_i32 = arith.constant 0 : i32
    %c0_i32_0 = arith.constant 0 : i32
    %c0_i32_1 = arith.constant 0 : i32
    return %c0_i32, %c0_i32_0 : i32, i32
  }
  func.func @transform_6(%arg0: i32) -> (i32, i32) {
    %c0_i32 = arith.constant 0 : i32
    %c0_i32_0 = arith.constant 0 : i32
    %c0_i32_1 = arith.constant 0 : i32
    return %c0_i32, %c0_i32_0 : i32, i32
  }
  func.func @transform_7(%arg0: i32) -> (i32, i32, i32) {
    %c0_i32 = arith.constant 0 : i32
    %c0_i32_0 = arith.constant 0 : i32
    %c0_i32_1 = arith.constant 0 : i32
    return %arg0, %c0_i32, %c0_i32_0 : i32, i32, i32
  }
}

</mosaic_0001>

<bundles_post_ra>
// kernel: tpu_custom_call.1
= control target key start
LH: loop header
LB: loop body
LE: loop exit
PB: predicated region body
PF: predicated region fallthrough
CT: control target
= control target key end

     0   :  { %12 = vsyncpa [#allocation3], 0  ;;  %s968_s0 = inlined_call_operand.hbm [shape: f32[2,8,32], index: 0, kind: input, shape index: {}]   ;;  %s969_s1 = inlined_call_operand.hbm [shape: f32[2,8,32], index: 1, kind: input, shape index: {}]   ;;  %s970_s2 = inlined_call_operand.hbm [shape: f32[2,8,32], index: 2, kind: input, shape index: {}]   ;;  %s971_s3 = inlined_call_operand.hbm [shape: f32[32,32], index: 3, kind: input, shape index: {}]   ;;  %s972_s4 = inlined_call_operand.vmem [shape: f32[1,32], index: 4, kind: input, shape index: {}]   ;;  %s973_s5 = inlined_call_operand.hbm [shape: f32[32,32], index: 5, kind: input, shape index: {}]   ;;  %s974_s6 = inlined_call_operand.vmem [shape: f32[1,32], index: 6, kind: input, shape index: {}]   ;;  %s975_s7 = inlined_call_operand.hbm [shape: f32[2,8,32], index: 7, kind: output, shape index: {}]  }
   0x1   :  { %13 = vsyncpa [#allocation6], 0 }
   0x2   :  { %14 = vsyncpa [#allocation9], 0 }
   0x3   :  { %15 = vsyncpa [#allocation4], 0  ;;  %s856_s24 = smov [#allocation5]   ;;  %s857_s26 = smov [#allocation8]  }
   0x4   :  { %s33_s25 = sshll.u32 %s856_s24, 4  ;;  %s57_s27 = sshll.u32 %s857_s26, 4  ;;  %s34_s25 = int_to_ptr.vmem [resolvable:$true] %s33_s25  ;;  %s58_s27 = int_to_ptr.vmem [resolvable:$true] %s57_s27 }
   0x5   :  { %s736_s28 = scalar_lea.vmem %s34_s25, 256  ;;  %p741_p1 = scmp.lt.s32.totalorder %s34_s25, %s34_s25 }
   0x6   :  { %p737_p0 = scmp.ne.s32.totalorder %s34_s25, %s736_s28  ;;  %p742_p2 = scmp.lt.s32.totalorder %s736_s28, %s736_s28 }
   0x8   :  { %p743_p3 = por %p742_p2, %p741_p1 }
   0xa   :  { %p744_p4 = pnand %p743_p3, %p737_p0 }
   0xc   :  { %747 = shalt.err (!%p744_p4)
}
   0xd   :  { %s858_s29 = smov 128   ;;  %s859_s30 = smov 8  }
   0xe   :  { %39 = dma.hbm_to_vmem [thread:$0]  %s969_s1, 256, %s34_s25, [#allocation6], %s858_s29, %s858_s29, %s859_s30  }
   0xf   :  { %s756_s10 = scalar_lea.vmem %s58_s27, 512  ;;  %p761_p6 = scmp.lt.s32.totalorder %s58_s27, %s58_s27 }
  0x10   :  { %p757_p5 = scmp.ne.s32.totalorder %s58_s27, %s756_s10  ;;  %p762_p7 = scmp.lt.s32.totalorder %s756_s10, %s756_s10 }
  0x12   :  { %p763_p8 = por %p762_p7, %p761_p6 }
  0x14   :  { %p764_p9 = pnand %p763_p8, %p757_p5 }
  0x16   :  { %767 = shalt.err (!%p764_p9)
}
  0x17   :  { %63 = dma.hbm_to_vmem [thread:$0]  %s971_s3, 512, %s58_s27, [#allocation9], %s858_s29, %s858_s29, %s859_s30  }
  0x18   :  { %s860_s13 = smov [#allocation2]   ;;  %s861_s15 = smov [#allocation7]  }
  0x19   :  { %s21_s14 = sshll.u32 %s860_s13, 4  ;;  %s45_s16 = sshll.u32 %s861_s15, 4  ;;  %s22_s14 = int_to_ptr.vmem [resolvable:$true] %s21_s14  ;;  %s46_s16 = int_to_ptr.vmem [resolvable:$true] %s45_s16 }
  0x1a   :  { %s776_s1 = scalar_lea.vmem %s22_s14, 256  ;;  %p781_p11 = scmp.lt.s32.totalorder %s22_s14, %s22_s14 }
  0x1b   :  { %p777_p10 = scmp.ne.s32.totalorder %s22_s14, %s776_s1  ;;  %p782_p12 = scmp.lt.s32.totalorder %s776_s1, %s776_s1 }
  0x1d   :  { %p783_p13 = por %p782_p12, %p781_p11 }
  0x1f   :  { %p784_p0 = pnand %p783_p13, %p777_p10 }
  0x21   :  { %787 = shalt.err (!%p784_p0)
}
  0x22   :  { %27 = dma.hbm_to_vmem [thread:$0]  %s968_s0, 256, %s22_s14, [#allocation3], %s858_s29, %s858_s29, %s859_s30  }
  0x23   :  { %s796_s3 = scalar_lea.vmem %s46_s16, 256  ;;  %p801_p2 = scmp.lt.s32.totalorder %s46_s16, %s46_s16 }
  0x24   :  { %p797_p1 = scmp.ne.s32.totalorder %s46_s16, %s796_s3  ;;  %p802_p3 = scmp.lt.s32.totalorder %s796_s3, %s796_s3 }
  0x26   :  { %p803_p4 = por %p802_p3, %p801_p2 }
  0x28   :  { %p804_p5 = pnand %p803_p4, %p797_p1 }
  0x2a   :  { %807 = shalt.err (!%p804_p5)
}
  0x2b   :  { %51 = dma.hbm_to_vmem [thread:$0]  %s970_s2, 256, %s46_s16, [#allocation6], %s858_s29, %s858_s29, %s859_s30  }
  0x2c   :  { %s862_s21 = smov [#allocation10]  }
  0x2d   :  { %s71_s22 = sshll.u32 %s862_s21, 4  ;;  %s72_s22 = int_to_ptr.vmem [resolvable:$true] %s71_s22 }
  0x2e   :  { %s816_s23 = scalar_lea.vmem %s72_s22, 512  ;;  %p821_p7 = scmp.lt.s32.totalorder %s72_s22, %s72_s22 }
  0x2f   :  { %p817_p6 = scmp.ne.s32.totalorder %s72_s22, %s816_s23  ;;  %p822_p8 = scmp.lt.s32.totalorder %s816_s23, %s816_s23 }
  0x31   :  { %p823_p9 = por %p822_p8, %p821_p7 }
  0x33   :  { %p824_p10 = pnand %p823_p9, %p817_p6 }
  0x35   :  { %827 = shalt.err (!%p824_p10)
}
  0x36   :  { %77 = dma.hbm_to_vmem [thread:$0]  %s973_s5, 512, %s72_s22, [#allocation9], %s858_s29, %s858_s29, %s859_s30  }
  0x37   :  { %848 = dma.done.wait [#allocation3], 256  }
  0x38   :  { %849 = vsyncadd [#allocation3], 4294967040 }
  0x39   :  { %850 = dma.done.wait [#allocation6], 512  }
  0x3a   :  { %851 = vsyncadd [#allocation6], 4294966784 }
  0x3b   :  { %852 = dma.done.wait [#allocation9], 1024  }
  0x3c   :  { %853 = vsyncadd [#allocation9], 4294966272  ;;  %v863_v0 = vmov 0.0   ;;  %vm864_vm0 = vmmov 0   ;;  %vm101_vm1 = vcmask 261120   ;;  %v97_v1 = vld [vmem:[#allocation5] sm:$0xff] }
  0x3d   :  { %668 = vmatprep.subr.mxu0 %v863_v0  ;;  %673 = vmatprep.subr.mxu1 %v863_v0  ;;  %v98_v2 = vld [vmem:[#allocation5 + $0x8] sm:$0xff]  ;;  %v95_v3 = vld [vmem:[#allocation2] sm:$0xff]  ;;  %v938_v4 = vld [vmem:[#allocation2 + $0x8] sm:$0xff]  ;;  %vm256_vm2 = vcmask 64512   ;;  %s865_s27 = smov [#allocation11]  }
  0x3e   :  { %670 = vmatprep.mubr.msk.f32.mxu0 %vm864_vm0, %v863_v0  ;;  %675 = vmatprep.mubr.msk.f32.mxu1 %vm864_vm0, %v863_v0  ;;  %v99_v13 = vld [vmem:[#allocation7] sm:$0xff]  ;;  %v100_v14 = vld [vmem:[#allocation7 + $0x8] sm:$0xff]  ;;  %v428_v27 = vld [vmem:[#allocation8 + $0x8] sm:$0xff]  ;;  %s622_s28 = sshll.u32 %s865_s27, 4  ;;  %s623_s28 = int_to_ptr.vmem [resolvable:$true] %s622_s28 }
  0x3f   :  { %669 = vmatpush3.xpose.msk.msra.mxu0 %vm101_vm1, %v97_v1  ;;  %674 = vmatpush3.xpose.msk.msra.mxu1 %vm101_vm1, %v98_v2  ;;  %v430_v25 = vld [vmem:[#allocation8 + $0x18] sm:$0xff]  ;;  %v429_v26 = vld [vmem:[#allocation8 + $0x10] sm:$0xff]  ;;  %v427_v28 = vld [vmem:[#allocation8] sm:$0xff]  ;;  %p833_p12 = scmp.lt.s32.totalorder %s623_s28, %s623_s28 }
  0x40   :  { %678 = vmatprep.subr.mxu0 %v863_v0  ;;  %683 = vmatprep.subr.mxu1 %v863_v0  ;;  %v434_v41 = vld [vmem:[#allocation10 + $0x18] sm:$0xff]  ;;  %v433_v42 = vld [vmem:[#allocation10 + $0x10] sm:$0xff]  ;;  %v432_v43 = vld [vmem:[#allocation10 + $0x8] sm:$0xff] }
  0x41   :  { %v431_v44 = vld [vmem:[#allocation10] sm:$0xff]  ;;  %v642_v45 = vld [vmem:[%s972_s4] ss:$0 sm:$0xff]  ;;  %s828_s4 = scalar_lea.vmem %s623_s28, 256 }
  0x42   :  { %671 = vmatmul.mubr.msk.f32.vlgmr.msra.gmra.mxu0 %vm101_vm1, %v95_v3  ;;  %676 = vmatmul.mubr.msk.f32.vlgmr.msra.gmra.mxu1 %vm101_vm1, %v938_v4  ;;  %v645_v52 = vld [vmem:[%s974_s6] ss:$0 sm:$0xff]  ;;  %p829_p11 = scmp.ne.s32.totalorder %s623_s28, %s828_s4  ;;  %p834_p13 = scmp.lt.s32.totalorder %s828_s4, %s828_s4 }
  0x43   :  { %680 = vmatprep.mubr.msk.f32.mxu0 %vm864_vm0, %v863_v0  ;;  %685 = vmatprep.mubr.msk.f32.mxu1 %vm864_vm0, %v863_v0 }
  0x44   :  { %679 = vmatpush3.msra.mxu0 %v99_v13  ;;  %684 = vmatpush3.msra.mxu1 %v100_v14  ;;  %p835_p0 = por %p834_p13, %p833_p12 }
  0x45   :  { %688 = vmatprep.subr.mxu0 %v430_v25  ;;  %699 = vmatprep.subr.mxu1 %v434_v41 }
  0x46   :  { %p836_p1 = pnand %p835_p0, %p829_p11 }
 0x102   :  { %v174_v5 = vpop.f32.mrf.mxu0  ;;  %v250_v6 = vpop.f32.mrf.mxu1 }
 0x103   :  { %v254_v7 = vmul.f32 0.17677669, %v174_v5  ;;  %v255_v8 = vmul.f32 0.17677669, %v250_v6 }
 0x104   :  { %v672_v9 = vpop.f32.mrf.mxu0  ;;  %v677_v10 = vpop.f32.mrf.mxu1 }
 0x105   :  { %v257_v11 = vsel %vm256_vm2, %v254_v7, -inf  ;;  %v260_v12 = vsel %vm256_vm2, %v255_v8, -inf }
 0x106   :  { %258 = vmax.xlane.f32.xlu0 %v257_v11 }
 0x10a   :  { %261 = vmax.xlane.f32.xlu0 %v260_v12 }
 0x18f   :  { %v259_v15 = vpop.xlane.xlu0 %258 }
 0x190   :  { %v263_v16 = vsub.f32 %v254_v7, %v259_v15 }
 0x192   :  { %v265_v17 = vmul.f32 1.442695, %v263_v16 }
 0x193   :  { %v262_v18 = vpop.xlane.xlu0 %261 }
 0x194   :  { %720 = vpow2.f32 %v265_v17  ;;  %v264_v19 = vsub.f32 %v255_v8, %v262_v18 }
 0x196   :  { %v267_v20 = vmul.f32 1.442695, %v264_v19 }
 0x198   :  { %722 = vpow2.f32 %v267_v20 }
 0x1a1   :  { %v721_v21 = vpop.eup %720 }
 0x1a2   :  { %681 = vmatmul.mubr.msk.f32.vlgmr.msra.gmra.mxu0 %vm256_vm2, %v721_v21  ;;  %v269_v22 = vsel %vm256_vm2, %v721_v21, 0.0 }
 0x1a3   :  { %270 = vadd.xlane.f32.xlu1 %v269_v22  ;;  %689 = vmatpush3.msra.mxu0 %v430_v25 }
 0x1a4   :  { %690 = vmatprep.subr.mxu0 %v429_v26 }
 0x1a5   :  { %v723_v23 = vpop.eup %722  ;;  %691 = vmatpush3.msra.mxu0 %v429_v26 }
 0x1a6   :  { %686 = vmatmul.mubr.msk.f32.vlgmr.msra.gmra.mxu1 %vm256_vm2, %v723_v23  ;;  %v272_v24 = vsel %vm256_vm2, %v723_v23, 0.0  ;;  %692 = vmatprep.subr.mxu0 %v428_v27 }
 0x1a7   :  { %273 = vadd.xlane.f32.xlu1 %v272_v24  ;;  %693 = vmatpush3.msra.mxu0 %v428_v27 }
 0x1a8   :  { %694 = vmatprep.subr.mxu0 %v427_v28  ;;  %700 = vmatpush3.msra.mxu1 %v434_v41 }
 0x1a9   :  { %695 = vmatpush3.msra.mxu0 %v427_v28  ;;  %701 = vmatprep.subr.mxu1 %v433_v42 }
 0x1aa   :  { %702 = vmatpush3.msra.mxu1 %v433_v42 }
 0x1ab   :  { %703 = vmatprep.subr.mxu1 %v432_v43 }
 0x1ac   :  { %704 = vmatpush3.msra.mxu1 %v432_v43 }
 0x1ad   :  { %705 = vmatprep.subr.mxu1 %v431_v44 }
 0x1ae   :  { %706 = vmatpush3.msra.mxu1 %v431_v44 }
 0x22c   :  { %v271_v29 = vpop.xlane.xlu1 %270 }
 0x22d   :  { %724 = vrcp.f32 %v271_v29 }
 0x230   :  { %v274_v30 = vpop.xlane.xlu1 %273 }
 0x231   :  { %726 = vrcp.f32 %v274_v30 }
 0x23a   :  { %v725_v31 = vpop.eup %724 }
 0x23e   :  { %v727_v36 = vpop.eup %726 }
 0x262   :  { %v344_v32 = vpop.f32.mrf.mxu0 }
 0x263   :  { %v422_v33 = vmul.f32 %v725_v31, %v344_v32 }
 0x264   :  { %v682_v34 = vpop.f32.mrf.mxu0 }
 0x265   :  { %v425_v35 = vadd.f32 %v422_v33, %v95_v3 }
 0x266   :  { %v417_v37 = vpop.f32.mrf.mxu1 }
 0x267   :  { %v424_v38 = vmul.f32 %v727_v36, %v417_v37  ;;  %696 = vmatprep.mubr.msk.f32.mxu0 %vm101_vm1, %v425_v35 }
 0x268   :  { %v687_v39 = vpop.f32.mrf.mxu1 }
 0x269   :  { %v426_v40 = vadd.f32 %v424_v38, %v938_v4 }
 0x26b   :  { %697 = vmatmul.mubr.msk.f32.vlgmr.msra.gmra.mxu0 %vm101_vm1, %v426_v40 }
 0x32b   :  { %v698_v46 = vpop.f32.mrf.mxu0 }
 0x32c   :  { %v521_v47 = vadd.f32 %v698_v46, %v642_v45 }
 0x32d   :  { %v515_v48 = vpop.f32.mrf.mxu0 }
 0x32e   :  { %v516_v49 = vadd.f32 %v642_v45, %v515_v48  ;;  %v525_v51 = vmax.f32 %v521_v47, 0.0 }
 0x330   :  { %v524_v50 = vmax.f32 %v516_v49, 0.0 }
 0x332   :  { %707 = vmatprep.mubr.msk.f32.mxu1 %vm101_vm1, %v524_v50 }
 0x333   :  { %708 = vmatmul.mubr.msk.f32.vlgmr.msra.gmra.mxu1 %vm101_vm1, %v525_v51 }
 0x3f3   :  { %v709_v53 = vpop.f32.mrf.mxu1 }
 0x3f4   :  { %v610_v54 = vadd.f32 %v709_v53, %v645_v52 }
 0x3f5   :  { %v604_v55 = vpop.f32.mrf.mxu1 }
 0x3f6   :  { %v614_v56 = vadd.f32 %v610_v54, %v426_v40  ;;  %v605_v57 = vadd.f32 %v645_v52, %v604_v55 }
 0x3f8   :  { %616 = vst.msk [vmem:[#allocation11 + $0x8] sm:$0xff] %vm101_vm1, %v614_v56  ;;  %v613_v58 = vadd.f32 %v605_v57, %v425_v35 }
 0x3fa   :  { %615 = vst.msk [vmem:[#allocation11] sm:$0xff] %vm101_vm1, %v613_v58 }
 0x3fb   :  { %839 = shalt.err (!%p836_p1)
}
 0x3fc   :  { %628 = dma.vmem_to_hbm [thread:$0]  %s623_s28, 256, %s975_s7, [#allocation4], %s858_s29, %s858_s29, %s859_s30  }
 0x3fd   :  { %854 = dma.done.wait [#allocation4], 256  }
 0x3fe   :  { %855 = vsyncadd [#allocation4], 4294967040 }
 0x3ff   :  { %632 = vsyncpa [#allocation3], 1 }
 0x400   :  { %633 = vsyncpa [#allocation6], 1 }
 0x401   :  { %634 = vsyncpa [#allocation9], 1 }
 0x402   :  { %635 = vsyncpa [#allocation4], 1 }

</bundles_post_ra>
